<compile_context>
chip_gen: v7x
topology: tpu7x:2x2x1
jax: 0.10.0
libtpu: 0.0.40
codegen_flags: <defaults>
</compile_context>

<pallas_src>
import functools
import inspect
import math

import jax
import jax.numpy as jnp
from jax import lax
from jax.experimental import pallas as pl
from jax.experimental.pallas import tpu as pltpu

EPS = 1e-5
LANE = 128


def _round_up(n, m):
    return (n + m - 1) // m * m


def _nbytes(shape, dtype):
    return int(math.prod(shape)) * jnp.dtype(dtype).itemsize


def _supports_pipeline_mode():
    if not hasattr(pl, "Buffered"):
        return False
    try:
        return "pipeline_mode" in inspect.signature(pl.BlockSpec).parameters
    except (TypeError, ValueError):
        return False


_HAS_PIPELINE_MODE = _supports_pipeline_mode()


# --------------------------------- kernel ----------------------------------------

def moe_kernel(x_ref, wcat_ref, bcat_ref, w2m_ref, b2m_ref, comb_ref, gate_ref,
               *, n_experts, hidden, ep):
    x = x_ref[...]                                                    # (TB, D) bf16

    # One wide MXU pass: gate in lanes [0, ep), expert e's fc1 in lanes
    # [ep + e*H, ep + (e+1)*H).  f32 accumulation, f32 bias add.
    xw = jnp.dot(x, wcat_ref[...],
                 preferred_element_type=jnp.float32) + bcat_ref[...]  # (TB, Ncat) f32

    gate = xw[:, :ep]                                                 # (TB, Ep) f32 (lane-aligned)
    gate_ref[...] = gate.astype(gate_ref.dtype)

    # Per-expert InstanceNorm + ReLU, with the gate weight folded in at H width.
    scaled = []
    for e in range(n_experts):            # static unroll; E is tiny (one expert per task)
        lo = ep + e * hidden
        h = xw[:, lo:lo + hidden]                                     # (TB, H) f32
        mean = jnp.mean(h, axis=-1, keepdims=True)
        hc = h - mean
        var = jnp.mean(hc * hc, axis=-1, keepdims=True)               # biased var
        hn = jnp.maximum(hc * lax.rsqrt(var + EPS), 0.0)
        scaled.append(hn * gate[:, e:e + 1])                          # gate applied AFTER relu

    hs = jnp.concatenate(scaled, axis=-1).astype(jnp.bfloat16)        # (TB, E*H)

    # Single MXU dot does every expert's (fused fc2@mapper) AND the gate-weighted sum;
    # a second tiny dot applies all gate-weighted fused biases at once.
    comb = jnp.dot(hs, w2m_ref[...], preferred_element_type=jnp.float32)
    comb = comb + jnp.dot(gate.astype(jnp.bfloat16), b2m_ref[...],
                          preferred_element_type=jnp.float32)
    comb_ref[...] = comb.astype(comb_ref.dtype)


# --------------------------------- wrapper ---------------------------------------

def dynamic_expert_forward(x, packed, *, batch_tile=None, out_dtype=jnp.float32):
    wcat, bcat, w2m_cat, b2m_all, meta = packed
    E, H, T = meta["n_experts"], meta["hidden"], meta["n_out"]
    B, D = x.shape
    Ncat = wcat.shape[1]
    Hcat = w2m_cat.shape[0]                      # E * H
    Tp = w2m_cat.shape[1]
    Ep = b2m_all.shape[0]

    # Batch tile: multiple of 16 (bf16 sublane pack), <=128 (vreg pressure), and >=2 grid
    # steps when the batch allows so the "parallel" axis can feed both v7x TensorCores.
    if batch_tile is not None:
        tb = batch_tile
    elif B > 2 * 128:
        tb = 128
    elif B >= 32:
        tb = _round_up(B, 32) // 2               # exactly two grid steps
    else:
        tb = _round_up(B, 16)                    # tiny batch: one step
    Bp = _round_up(B, tb)

    x_p = x if Bp == B else jnp.pad(x, ((0, Bp - B), (0, 0)))
    x_p = x_p.astype(jnp.bfloat16)

    kernel = functools.partial(moe_kernel, n_experts=E, hidden=H, ep=Ep)

    # Explicit VMEM budget (conservative: assumes double-buffered weights) so the same
    # plan holds on v7x's 64 MiB physical VMEM as well as v5e/v6e's 128 MiB.
    weight_bytes = (_nbytes((D, Ncat), jnp.bfloat16) + _nbytes((1, Ncat), jnp.float32)
                    + _nbytes((Hcat, Tp), jnp.bfloat16) + _nbytes((Ep, Tp), jnp.bfloat16))
    stream_bytes = 2 * (_nbytes((tb, D), jnp.bfloat16)
                        + _nbytes((tb, Tp), out_dtype) + _nbytes((tb, Ep), out_dtype))
    vmem_limit = int(min(64 << 20, max(8 << 20, 2 * (2 * weight_bytes + stream_bytes))))

    cost = pl.CostEstimate(
        flops=2 * Bp * (D * Ncat + Hcat * Tp + Ep * Tp),
        transcendentals=Bp * E,
        bytes_accessed=(_nbytes((Bp, D), jnp.bfloat16) + weight_bytes
                        + _nbytes((Bp, Tp), out_dtype) + _nbytes((Bp, Ep), out_dtype)),
    )

    def _call(single_buffer_weights):
        def const_spec(shape):
            index_map = lambda b: (0,) * len(shape)
            if single_buffer_weights:
                return pl.BlockSpec(shape, index_map, pipeline_mode=pl.Buffered(1))
            return pl.BlockSpec(shape, index_map)

        return pl.pallas_call(
            kernel,
            out_shape=(jax.ShapeDtypeStruct((Bp, Tp), out_dtype),
                       jax.ShapeDtypeStruct((Bp, Ep), out_dtype)),
            grid_spec=pltpu.PrefetchScalarGridSpec(
                num_scalar_prefetch=0,
                grid=(Bp // tb,),
                in_specs=[
                    pl.BlockSpec((tb, D), lambda b: (b, 0)),   # x batch tile (bf16)
                    const_spec((D, Ncat)),     # [gate | fc1_0 | ... | fc1_{E-1}] weights (bf16)
                    const_spec((1, Ncat)),     # concatenated gate/fc1 biases (f32)
                    const_spec((Hcat, Tp)),    # fused fc2@mapper weights, row-stacked (bf16)
                    const_spec((Ep, Tp)),      # fused biases, one row per expert (bf16)
                ],
                out_specs=[pl.BlockSpec((tb, Tp), lambda b: (b, 0)),
                           pl.BlockSpec((tb, Ep), lambda b: (b, 0))],
            ),
            compiler_params=pltpu.CompilerParams(
                dimension_semantics=("parallel",),
                vmem_limit_bytes=vmem_limit),
            cost_estimate=cost,
        )(x_p, wcat, bcat, w2m_cat, b2m_all)

    if _HAS_PIPELINE_MODE:
        try:
            comb_p, gate_p = _call(True)
        except Exception:                      # graceful fallback: double-buffered weights
            comb_p, gate_p = _call(False)
    else:
        comb_p, gate_p = _call(False)

    return comb_p[:B, :T], gate_p[:B, :E]


# ---------------- deterministic parameter construction (mirrors expand_expert) ----

def xavier_uniform(key, shape):  # shape = (out, in)
    fan_out, fan_in = shape
    lim = (6.0 / (fan_in + fan_out)) ** 0.5
    return jax.random.uniform(key, shape, jnp.float32, -lim, lim)


def build_params(key, D, H, classes):
    E = len(classes)
    T = int(sum(classes))
    keys = jax.random.split(key, 2 + E)

    # gate = Linear(D, E) with torch-default uniform init
    gb = 1.0 / (D ** 0.5)
    wg = jax.random.uniform(keys[0], (E, D), jnp.float32, -gb, gb)
    bg = jax.random.uniform(keys[1], (E,), jnp.float32, -gb, gb)

    W1, b1, W2, b2, Wm = [], [], [], [], []
    start = 0
    for i, c in enumerate(classes):
        k1, k2, k3, k4, k5 = jax.random.split(keys[2 + i], 5)
        W1.append(xavier_uniform(k1, (H, D)))
        b1.append(jax.random.uniform(k2, (H,), jnp.float32, -1.0 / D ** 0.5, 1.0 / D ** 0.5))
        W2.append(xavier_uniform(k3, (c, H)))
        b2.append(jax.random.uniform(k4, (c,), jnp.float32, -1.0 / H ** 0.5, 1.0 / H ** 0.5))
        # original square mapper (c, c), no bias
        mb = 1.0 / (c ** 0.5)
        m_orig = jax.random.uniform(k5, (c, c), jnp.float32, -mb, mb)
        # expand_expert remapping: rows [start:start+c] = original weight, other rows = 0
        m_full = jnp.zeros((T, c), jnp.float32).at[start:start + c, :].set(m_orig)
        Wm.append(m_full)
        start += c

    raw = dict(wg=wg, bg=bg, W1=W1, b1=b1, W2=W2, b2=b2, Wm=Wm, classes=classes)

    # ---- pack for the kernel ------------------------------------------------------
    Ep = _round_up(E, LANE)
    Tp = _round_up(T, LANE)
    Hcat = E * H
    Ncat = _round_up(Ep + Hcat, LANE)

    # One lane-dense operand for the first matmul: [ gate | fc1_0 | ... | fc1_{E-1} ].
    wcat = jnp.zeros((D, Ncat), jnp.float32).at[:, :E].set(wg.T)
    bcat = jnp.zeros((1, Ncat), jnp.float32).at[0, :E].set(bg)
    for e in range(E):
        lo = Ep + e * H
        wcat = wcat.at[:, lo:lo + H].set(W1[e].T)
        bcat = bcat.at[0, lo:lo + H].set(b1[e])

    # Exact fusion of fc2 + block-remapped mapper (no nonlinearity in between):
    #   W2m_e = W2_e^T @ Wm_e^T   (H, T),   b2m_e = b2_e @ Wm_e^T   (T,)
    w2m_rows = [W2[e].T @ Wm[e].T for e in range(E)]
    b2m_rows = [b2[e] @ Wm[e].T for e in range(E)]
    w2m_cat = jnp.zeros((Hcat, Tp), jnp.float32).at[:, :T].set(
        jnp.concatenate(w2m_rows, axis=0))                 # row-stacked over experts
    b2m_all = jnp.zeros((Ep, Tp), jnp.float32).at[:E, :T].set(jnp.stack(b2m_rows))

    packed = (wcat.astype(jnp.bfloat16), bcat,
              w2m_cat.astype(jnp.bfloat16), b2m_all.astype(jnp.bfloat16),
              dict(n_experts=E, hidden=H, n_out=T))
    return raw, packed


def reference(x, raw):
    """Pure-JAX (f32) reproduction of DynamicExpert.forward(train_step=2)."""
    gate = x @ raw['wg'].T + raw['bg']
    outs = []
    for i in range(len(raw['classes'])):
        h = x @ raw['W1'][i].T + raw['b1'][i]
        mean = h.mean(-1, keepdims=True)
        var = ((h - mean) ** 2).mean(-1, keepdims=True)
        h = jnp.maximum((h - mean) * lax.rsqrt(var + EPS), 0.0)
        o = h @ raw['W2'][i].T + raw['b2'][i]
        outs.append(o @ raw['Wm'][i].T)
    stacked = jnp.stack(outs, 1)                        # (B, E, T)
    comb = jnp.squeeze(gate[:, None, :] @ stacked, 1)   # (B, T)
    return comb, gate


if __name__ == "__main__":
    B, D, H = 8, 64, 32          # batch, input_size, hidden_size (scaled-down defaults)
    classes = [8, 8]             # new_cls per task after two expand_expert() calls
    key = jax.random.PRNGKey(0)
    kp, kx = jax.random.split(key)

    raw, packed = build_params(kp, D, H, classes)
    x = jax.random.normal(kx, (B, D), jnp.float32)

    comb, gate = dynamic_expert_forward(x, packed)
    jax.block_until_ready((comb, gate))

    # f32 reference; tolerance accounts for bf16 matmul-operand quantization in the kernel.
    comb_ref, gate_ref = reference(x, raw)
    assert comb.shape == comb_ref.shape and gate.shape == gate_ref.shape
    assert jnp.allclose(gate, gate_ref, atol=5e-2, rtol=5e-2), "gate mismatch"
    assert jnp.allclose(comb, comb_ref, atol=5e-2, rtol=5e-2), "expert mixture mismatch"
    print("KERNEL_OK")
</pallas_src>

<mosaic_0001>
module attributes {stable_mosaic.version = 11 : i64} {
  func.func @moe_kernel(%arg0: i32, %arg1: memref<16x64xbf16, #tpu.memory_space<vmem>>, %arg2: memref<64x256xbf16, #tpu.memory_space<vmem>>, %arg3: memref<1x256xf32, #tpu.memory_space<vmem>>, %arg4: memref<64x128xbf16, #tpu.memory_space<vmem>>, %arg5: memref<128x128xbf16, #tpu.memory_space<vmem>>, %arg6: memref<16x128xf32, #tpu.memory_space<vmem>>, %arg7: memref<16x128xf32, #tpu.memory_space<vmem>>) attributes {dimension_semantics = [#tpu.dimension_semantics<parallel>], iteration_bounds = array<i64: 1>, scalar_prefetch = 0 : i64, scratch_operands = 0 : i64, tpu.core_type = #tpu.core_type<tc>, window_params = [{transform_indices = @transform_0, window_bounds = array<i64: 16, 64>}, {pipeline_mode = #tpu.pipeline_mode<synchronous>, transform_indices = @transform_1, window_bounds = array<i64: 64, 256>}, {pipeline_mode = #tpu.pipeline_mode<synchronous>, transform_indices = @transform_2, window_bounds = array<i64: 1, 256>}, {pipeline_mode = #tpu.pipeline_mode<synchronous>, transform_indices = @transform_3, window_bounds = array<i64: 64, 128>}, {pipeline_mode = #tpu.pipeline_mode<synchronous>, transform_indices = @transform_4, window_bounds = array<i64: 128, 128>}, {transform_indices = @transform_5, window_bounds = array<i64: 16, 128>}, {transform_indices = @transform_6, window_bounds = array<i64: 16, 128>}]} {
    %c0 = arith.constant 0 : index
    %c0_0 = arith.constant 0 : index
    %0 = vector.load %arg1[%c0, %c0_0] : memref<16x64xbf16, #tpu.memory_space<vmem>>, vector<16x64xbf16>
    %c0_1 = arith.constant 0 : index
    %c0_2 = arith.constant 0 : index
    %1 = vector.load %arg2[%c0_1, %c0_2] : memref<64x256xbf16, #tpu.memory_space<vmem>>, vector<64x256xbf16>
    %cst = arith.constant dense<0.000000e+00> : vector<16x256xf32>
    %2 = tpu.matmul %0, %1, %cst {dimension_numbers = #tpu.dot_dimension_numbers<[1], [0], [0], [1], [0, 0, 1, 1], [], []>} : vector<16x64xbf16>, vector<64x256xbf16>, vector<16x256xf32> -> vector<16x256xf32>
    %c0_3 = arith.constant 0 : index
    %c0_4 = arith.constant 0 : index
    %3 = vector.load %arg3[%c0_3, %c0_4] : memref<1x256xf32, #tpu.memory_space<vmem>>, vector<1x256xf32>
    %4 = vector.broadcast %3 : vector<1x256xf32> to vector<16x256xf32>
    %5 = arith.addf %2, %4 : vector<16x256xf32>
    %6 = vector.extract_strided_slice %5 {offsets = [0, 0], sizes = [16, 128], strides = [1, 1]} : vector<16x256xf32> to vector<16x128xf32>
    %c0_5 = arith.constant 0 : index
    %c0_6 = arith.constant 0 : index
    %7 = vector.load %arg7[%c0_5, %c0_6] : memref<16x128xf32, #tpu.memory_space<vmem>>, vector<16x128xf32>
    tpu.vector_store %arg7[%c0_5, %c0_6], %6 {strides = array<i32>} : memref<16x128xf32, #tpu.memory_space<vmem>>, vector<16x128xf32>,
    %8 = vector.extract_strided_slice %5 {offsets = [0, 128], sizes = [16, 32], strides = [1, 1]} : vector<16x256xf32> to vector<16x32xf32>
    %cst_7 = arith.constant dense<0.000000e+00> : vector<16xf32>
    %9 = vector.multi_reduction <add>, %8, %cst_7 [1] : vector<16x32xf32> to vector<16xf32>
    %10 = vector.shape_cast %9 : vector<16xf32> to vector<16x1xf32>
    %cst_8 = arith.constant 3.200000e+01 : f32
    %11 = vector.broadcast %cst_8 : f32 to vector<16x1xf32>
    %12 = arith.divf %10, %11 : vector<16x1xf32>
    %13 = vector.broadcast %12 : vector<16x1xf32> to vector<16x32xf32>
    %14 = arith.subf %8, %13 : vector<16x32xf32>
    %15 = arith.mulf %14, %14 : vector<16x32xf32>
    %cst_9 = arith.constant dense<0.000000e+00> : vector<16xf32>
    %16 = vector.multi_reduction <add>, %15, %cst_9 [1] : vector<16x32xf32> to vector<16xf32>
    %17 = vector.shape_cast %16 : vector<16xf32> to vector<16x1xf32>
    %cst_10 = arith.constant 3.200000e+01 : f32
    %18 = vector.broadcast %cst_10 : f32 to vector<16x1xf32>
    %19 = arith.divf %17, %18 : vector<16x1xf32>
    %cst_11 = arith.constant 9.99999974E-6 : f32
    %20 = vector.broadcast %cst_11 : f32 to vector<16x1xf32>
    %21 = arith.addf %19, %20 : vector<16x1xf32>
    %22 = math.rsqrt %21 : vector<16x1xf32>
    %23 = vector.broadcast %22 : vector<16x1xf32> to vector<16x32xf32>
    %24 = arith.mulf %14, %23 : vector<16x32xf32>
    %cst_12 = arith.constant 0.000000e+00 : f32
    %25 = vector.broadcast %cst_12 : f32 to vector<16x32xf32>
    %26 = arith.maximumf %24, %25 : vector<16x32xf32>
    %27 = vector.extract_strided_slice %6 {offsets = [0, 0], sizes = [16, 1], strides = [1, 1]} : vector<16x128xf32> to vector<16x1xf32>
    %28 = vector.broadcast %27 : vector<16x1xf32> to vector<16x32xf32>
    %29 = arith.mulf %26, %28 : vector<16x32xf32>
    %30 = vector.extract_strided_slice %5 {offsets = [0, 160], sizes = [16, 32], strides = [1, 1]} : vector<16x256xf32> to vector<16x32xf32>
    %cst_13 = arith.constant dense<0.000000e+00> : vector<16xf32>
    %31 = vector.multi_reduction <add>, %30, %cst_13 [1] : vector<16x32xf32> to vector<16xf32>
    %32 = vector.shape_cast %31 : vector<16xf32> to vector<16x1xf32>
    %cst_14 = arith.constant 3.200000e+01 : f32
    %33 = vector.broadcast %cst_14 : f32 to vector<16x1xf32>
    %34 = arith.divf %32, %33 : vector<16x1xf32>
    %35 = vector.broadcast %34 : vector<16x1xf32> to vector<16x32xf32>
    %36 = arith.subf %30, %35 : vector<16x32xf32>
    %37 = arith.mulf %36, %36 : vector<16x32xf32>
    %cst_15 = arith.constant dense<0.000000e+00> : vector<16xf32>
    %38 = vector.multi_reduction <add>, %37, %cst_15 [1] : vector<16x32xf32> to vector<16xf32>
    %39 = vector.shape_cast %38 : vector<16xf32> to vector<16x1xf32>
    %cst_16 = arith.constant 3.200000e+01 : f32
    %40 = vector.broadcast %cst_16 : f32 to vector<16x1xf32>
    %41 = arith.divf %39, %40 : vector<16x1xf32>
    %cst_17 = arith.constant 9.99999974E-6 : f32
    %42 = vector.broadcast %cst_17 : f32 to vector<16x1xf32>
    %43 = arith.addf %41, %42 : vector<16x1xf32>
    %44 = math.rsqrt %43 : vector<16x1xf32>
    %45 = vector.broadcast %44 : vector<16x1xf32> to vector<16x32xf32>
    %46 = arith.mulf %36, %45 : vector<16x32xf32>
    %cst_18 = arith.constant 0.000000e+00 : f32
    %47 = vector.broadcast %cst_18 : f32 to vector<16x32xf32>
    %48 = arith.maximumf %46, %47 : vector<16x32xf32>
    %49 = vector.extract_strided_slice %6 {offsets = [0, 1], sizes = [16, 1], strides = [1, 1]} : vector<16x128xf32> to vector<16x1xf32>
    %50 = vector.broadcast %49 : vector<16x1xf32> to vector<16x32xf32>
    %51 = arith.mulf %48, %50 : vector<16x32xf32>
    %52 = tpu.concatenate %29, %51 in 1 : vector<16x32xf32>, vector<16x32xf32> -> vector<16x64xf32>
    %53 = arith.truncf %52 : vector<16x64xf32> to vector<16x64xbf16>
    %c0_19 = arith.constant 0 : index
    %c0_20 = arith.constant 0 : index
    %54 = vector.load %arg4[%c0_19, %c0_20] : memref<64x128xbf16, #tpu.memory_space<vmem>>, vector<64x128xbf16>
    %cst_21 = arith.constant dense<0.000000e+00> : vector<16x128xf32>
    %55 = tpu.matmul %53, %54, %cst_21 {dimension_numbers = #tpu.dot_dimension_numbers<[1], [0], [0], [1], [0, 0, 1, 1], [], []>} : vector<16x64xbf16>, vector<64x128xbf16>, vector<16x128xf32> -> vector<16x128xf32>
    %56 = arith.truncf %6 : vector<16x128xf32> to vector<16x128xbf16>
    %c0_22 = arith.constant 0 : index
    %c0_23 = arith.constant 0 : index
    %57 = vector.load %arg5[%c0_22, %c0_23] : memref<128x128xbf16, #tpu.memory_space<vmem>>, vector<128x128xbf16>
    %cst_24 = arith.constant dense<0.000000e+00> : vector<16x128xf32>
    %58 = tpu.matmul %56, %57, %cst_24 {dimension_numbers = #tpu.dot_dimension_numbers<[1], [0], [0], [1], [0, 0, 1, 1], [], []>} : vector<16x128xbf16>, vector<128x128xbf16>, vector<16x128xf32> -> vector<16x128xf32>
    %59 = arith.addf %55, %58 : vector<16x128xf32>
    %c0_25 = arith.constant 0 : index
    %c0_26 = arith.constant 0 : index
    %60 = vector.load %arg6[%c0_25, %c0_26] : memref<16x128xf32, #tpu.memory_space<vmem>>, vector<16x128xf32>
    tpu.vector_store %arg6[%c0_25, %c0_26], %59 {strides = array<i32>} : memref<16x128xf32, #tpu.memory_space<vmem>>, vector<16x128xf32>,
    return
  }
  func.func @transform_0(%arg0: i32) -> (i32, i32) {
    %c0_i32 = arith.constant 0 : i32
    %c0_i32_0 = arith.constant 0 : i32
    return %arg0, %c0_i32 : i32, i32
  }
  func.func @transform_1(%arg0: i32) -> (i32, i32) {
    %c0_i32 = arith.constant 0 : i32
    %c0_i32_0 = arith.constant 0 : i32
    %c0_i32_1 = arith.constant 0 : i32
    return %c0_i32, %c0_i32_0 : i32, i32
  }
  func.func @transform_2(%arg0: i32) -> (i32, i32) {
    %c0_i32 = arith.constant 0 : i32
    %c0_i32_0 = arith.constant 0 : i32
    %c0_i32_1 = arith.constant 0 : i32
    return %c0_i32, %c0_i32_0 : i32, i32
  }
  func.func @transform_3(%arg0: i32) -> (i32, i32) {
    %c0_i32 = arith.constant 0 : i32
    %c0_i32_0 = arith.constant 0 : i32
    %c0_i32_1 = arith.constant 0 : i32
    return %c0_i32, %c0_i32_0 : i32, i32
  }
  func.func @transform_4(%arg0: i32) -> (i32, i32) {
    %c0_i32 = arith.constant 0 : i32
    %c0_i32_0 = arith.constant 0 : i32
    %c0_i32_1 = arith.constant 0 : i32
    return %c0_i32, %c0_i32_0 : i32, i32
  }
  func.func @transform_5(%arg0: i32) -> (i32, i32) {
    %c0_i32 = arith.constant 0 : i32
    %c0_i32_0 = arith.constant 0 : i32
    return %arg0, %c0_i32 : i32, i32
  }
  func.func @transform_6(%arg0: i32) -> (i32, i32) {
    %c0_i32 = arith.constant 0 : i32
    %c0_i32_0 = arith.constant 0 : i32
    return %arg0, %c0_i32 : i32, i32
  }
}

module attributes {stable_mosaic.version = 11 : i64} {
  func.func @moe_kernel(%arg0: i32, %arg1: memref<16x64xbf16, #tpu.memory_space<vmem>>, %arg2: memref<64x256xbf16, #tpu.memory_space<vmem>>, %arg3: memref<1x256xf32, #tpu.memory_space<vmem>>, %arg4: memref<64x128xbf16, #tpu.memory_space<vmem>>, %arg5: memref<128x128xbf16, #tpu.memory_space<vmem>>, %arg6: memref<16x128xf32, #tpu.memory_space<vmem>>, %arg7: memref<16x128xf32, #tpu.memory_space<vmem>>) attributes {dimension_semantics = [#tpu.dimension_semantics<parallel>], iteration_bounds = array<i64: 1>, scalar_prefetch = 0 : i64, scratch_operands = 0 : i64, tpu.core_type = #tpu.core_type<tc>, window_params = [{transform_indices = @transform_0, window_bounds = array<i64: 16, 64>}, {pipeline_mode = #tpu.pipeline_mode<synchronous>, transform_indices = @transform_1, window_bounds = array<i64: 64, 256>}, {pipeline_mode = #tpu.pipeline_mode<synchronous>, transform_indices = @transform_2, window_bounds = array<i64: 1, 256>}, {pipeline_mode = #tpu.pipeline_mode<synchronous>, transform_indices = @transform_3, window_bounds = array<i64: 64, 128>}, {pipeline_mode = #tpu.pipeline_mode<synchronous>, transform_indices = @transform_4, window_bounds = array<i64: 128, 128>}, {transform_indices = @transform_5, window_bounds = array<i64: 16, 128>}, {transform_indices = @transform_6, window_bounds = array<i64: 16, 128>}]} {
    %c0 = arith.constant 0 : index
    %c0_0 = arith.constant 0 : index
    %0 = vector.load %arg1[%c0, %c0_0] : memref<16x64xbf16, #tpu.memory_space<vmem>>, vector<16x64xbf16>
    %c0_1 = arith.constant 0 : index
    %c0_2 = arith.constant 0 : index
    %1 = vector.load %arg2[%c0_1, %c0_2] : memref<64x256xbf16, #tpu.memory_space<vmem>>, vector<64x256xbf16>
    %cst = arith.constant dense<0.000000e+00> : vector<16x256xf32>
    %2 = tpu.matmul %0, %1, %cst {dimension_numbers = #tpu.dot_dimension_numbers<[1], [0], [0], [1], [0, 0, 1, 1], [], []>} : vector<16x64xbf16>, vector<64x256xbf16>, vector<16x256xf32> -> vector<16x256xf32>
    %c0_3 = arith.constant 0 : index
    %c0_4 = arith.constant 0 : index
    %3 = vector.load %arg3[%c0_3, %c0_4] : memref<1x256xf32, #tpu.memory_space<vmem>>, vector<1x256xf32>
    %4 = vector.broadcast %3 : vector<1x256xf32> to vector<16x256xf32>
    %5 = arith.addf %2, %4 : vector<16x256xf32>
    %6 = vector.extract_strided_slice %5 {offsets = [0, 0], sizes = [16, 128], strides = [1, 1]} : vector<16x256xf32> to vector<16x128xf32>
    %c0_5 = arith.constant 0 : index
    %c0_6 = arith.constant 0 : index
    %7 = vector.load %arg7[%c0_5, %c0_6] : memref<16x128xf32, #tpu.memory_space<vmem>>, vector<16x128xf32>
    tpu.vector_store %arg7[%c0_5, %c0_6], %6 {strides = array<i32>} : memref<16x128xf32, #tpu.memory_space<vmem>>, vector<16x128xf32>,
    %8 = vector.extract_strided_slice %5 {offsets = [0, 128], sizes = [16, 32], strides = [1, 1]} : vector<16x256xf32> to vector<16x32xf32>
    %cst_7 = arith.constant dense<0.000000e+00> : vector<16xf32>
    %9 = vector.multi_reduction <add>, %8, %cst_7 [1] : vector<16x32xf32> to vector<16xf32>
    %10 = vector.shape_cast %9 : vector<16xf32> to vector<16x1xf32>
    %cst_8 = arith.constant 3.200000e+01 : f32
    %11 = vector.broadcast %cst_8 : f32 to vector<16x1xf32>
    %12 = arith.divf %10, %11 : vector<16x1xf32>
    %13 = vector.broadcast %12 : vector<16x1xf32> to vector<16x32xf32>
    %14 = arith.subf %8, %13 : vector<16x32xf32>
    %15 = arith.mulf %14, %14 : vector<16x32xf32>
    %cst_9 = arith.constant dense<0.000000e+00> : vector<16xf32>
    %16 = vector.multi_reduction <add>, %15, %cst_9 [1] : vector<16x32xf32> to vector<16xf32>
    %17 = vector.shape_cast %16 : vector<16xf32> to vector<16x1xf32>
    %cst_10 = arith.constant 3.200000e+01 : f32
    %18 = vector.broadcast %cst_10 : f32 to vector<16x1xf32>
    %19 = arith.divf %17, %18 : vector<16x1xf32>
    %cst_11 = arith.constant 9.99999974E-6 : f32
    %20 = vector.broadcast %cst_11 : f32 to vector<16x1xf32>
    %21 = arith.addf %19, %20 : vector<16x1xf32>
    %22 = math.rsqrt %21 : vector<16x1xf32>
    %23 = vector.broadcast %22 : vector<16x1xf32> to vector<16x32xf32>
    %24 = arith.mulf %14, %23 : vector<16x32xf32>
    %cst_12 = arith.constant 0.000000e+00 : f32
    %25 = vector.broadcast %cst_12 : f32 to vector<16x32xf32>
    %26 = arith.maximumf %24, %25 : vector<16x32xf32>
    %27 = vector.extract_strided_slice %6 {offsets = [0, 0], sizes = [16, 1], strides = [1, 1]} : vector<16x128xf32> to vector<16x1xf32>
    %28 = vector.broadcast %27 : vector<16x1xf32> to vector<16x32xf32>
    %29 = arith.mulf %26, %28 : vector<16x32xf32>
    %30 = vector.extract_strided_slice %5 {offsets = [0, 160], sizes = [16, 32], strides = [1, 1]} : vector<16x256xf32> to vector<16x32xf32>
    %cst_13 = arith.constant dense<0.000000e+00> : vector<16xf32>
    %31 = vector.multi_reduction <add>, %30, %cst_13 [1] : vector<16x32xf32> to vector<16xf32>
    %32 = vector.shape_cast %31 : vector<16xf32> to vector<16x1xf32>
    %cst_14 = arith.constant 3.200000e+01 : f32
    %33 = vector.broadcast %cst_14 : f32 to vector<16x1xf32>
    %34 = arith.divf %32, %33 : vector<16x1xf32>
    %35 = vector.broadcast %34 : vector<16x1xf32> to vector<16x32xf32>
    %36 = arith.subf %30, %35 : vector<16x32xf32>
    %37 = arith.mulf %36, %36 : vector<16x32xf32>
    %cst_15 = arith.constant dense<0.000000e+00> : vector<16xf32>
    %38 = vector.multi_reduction <add>, %37, %cst_15 [1] : vector<16x32xf32> to vector<16xf32>
    %39 = vector.shape_cast %38 : vector<16xf32> to vector<16x1xf32>
    %cst_16 = arith.constant 3.200000e+01 : f32
    %40 = vector.broadcast %cst_16 : f32 to vector<16x1xf32>
    %41 = arith.divf %39, %40 : vector<16x1xf32>
    %cst_17 = arith.constant 9.99999974E-6 : f32
    %42 = vector.broadcast %cst_17 : f32 to vector<16x1xf32>
    %43 = arith.addf %41, %42 : vector<16x1xf32>
    %44 = math.rsqrt %43 : vector<16x1xf32>
    %45 = vector.broadcast %44 : vector<16x1xf32> to vector<16x32xf32>
    %46 = arith.mulf %36, %45 : vector<16x32xf32>
    %cst_18 = arith.constant 0.000000e+00 : f32
    %47 = vector.broadcast %cst_18 : f32 to vector<16x32xf32>
    %48 = arith.maximumf %46, %47 : vector<16x32xf32>
    %49 = vector.extract_strided_slice %6 {offsets = [0, 1], sizes = [16, 1], strides = [1, 1]} : vector<16x128xf32> to vector<16x1xf32>
    %50 = vector.broadcast %49 : vector<16x1xf32> to vector<16x32xf32>
    %51 = arith.mulf %48, %50 : vector<16x32xf32>
    %52 = tpu.concatenate %29, %51 in 1 : vector<16x32xf32>, vector<16x32xf32> -> vector<16x64xf32>
    %53 = arith.truncf %52 : vector<16x64xf32> to vector<16x64xbf16>
    %c0_19 = arith.constant 0 : index
    %c0_20 = arith.constant 0 : index
    %54 = vector.load %arg4[%c0_19, %c0_20] : memref<64x128xbf16, #tpu.memory_space<vmem>>, vector<64x128xbf16>
    %cst_21 = arith.constant dense<0.000000e+00> : vector<16x128xf32>
    %55 = tpu.matmul %53, %54, %cst_21 {dimension_numbers = #tpu.dot_dimension_numbers<[1], [0], [0], [1], [0, 0, 1, 1], [], []>} : vector<16x64xbf16>, vector<64x128xbf16>, vector<16x128xf32> -> vector<16x128xf32>
    %56 = arith.truncf %6 : vector<16x128xf32> to vector<16x128xbf16>
    %c0_22 = arith.constant 0 : index
    %c0_23 = arith.constant 0 : index
    %57 = vector.load %arg5[%c0_22, %c0_23] : memref<128x128xbf16, #tpu.memory_space<vmem>>, vector<128x128xbf16>
    %cst_24 = arith.constant dense<0.000000e+00> : vector<16x128xf32>
    %58 = tpu.matmul %56, %57, %cst_24 {dimension_numbers = #tpu.dot_dimension_numbers<[1], [0], [0], [1], [0, 0, 1, 1], [], []>} : vector<16x128xbf16>, vector<128x128xbf16>, vector<16x128xf32> -> vector<16x128xf32>
    %59 = arith.addf %55, %58 : vector<16x128xf32>
    %c0_25 = arith.constant 0 : index
    %c0_26 = arith.constant 0 : index
    %60 = vector.load %arg6[%c0_25, %c0_26] : memref<16x128xf32, #tpu.memory_space<vmem>>, vector<16x128xf32>
    tpu.vector_store %arg6[%c0_25, %c0_26], %59 {strides = array<i32>} : memref<16x128xf32, #tpu.memory_space<vmem>>, vector<16x128xf32>,
    return
  }
  func.func @transform_0(%arg0: i32) -> (i32, i32) {
    %c0_i32 = arith.constant 0 : i32
    %c0_i32_0 = arith.constant 0 : i32
    return %arg0, %c0_i32 : i32, i32
  }
  func.func @transform_1(%arg0: i32) -> (i32, i32) {
    %c0_i32 = arith.constant 0 : i32
    %c0_i32_0 = arith.constant 0 : i32
    %c0_i32_1 = arith.constant 0 : i32
    return %c0_i32, %c0_i32_0 : i32, i32
  }
  func.func @transform_2(%arg0: i32) -> (i32, i32) {
    %c0_i32 = arith.constant 0 : i32
    %c0_i32_0 = arith.constant 0 : i32
    %c0_i32_1 = arith.constant 0 : i32
    return %c0_i32, %c0_i32_0 : i32, i32
  }
  func.func @transform_3(%arg0: i32) -> (i32, i32) {
    %c0_i32 = arith.constant 0 : i32
    %c0_i32_0 = arith.constant 0 : i32
    %c0_i32_1 = arith.constant 0 : i32
    return %c0_i32, %c0_i32_0 : i32, i32
  }
  func.func @transform_4(%arg0: i32) -> (i32, i32) {
    %c0_i32 = arith.constant 0 : i32
    %c0_i32_0 = arith.constant 0 : i32
    %c0_i32_1 = arith.constant 0 : i32
    return %c0_i32, %c0_i32_0 : i32, i32
  }
  func.func @transform_5(%arg0: i32) -> (i32, i32) {
    %c0_i32 = arith.constant 0 : i32
    %c0_i32_0 = arith.constant 0 : i32
    return %arg0, %c0_i32 : i32, i32
  }
  func.func @transform_6(%arg0: i32) -> (i32, i32) {
    %c0_i32 = arith.constant 0 : i32
    %c0_i32_0 = arith.constant 0 : i32
    return %arg0, %c0_i32 : i32, i32
  }
}

</mosaic_0001>

<bundles_post_ra>
// kernel: tpu_custom_call.1
= control target key start
LH: loop header
LB: loop body
LE: loop exit
PB: predicated region body
PF: predicated region fallthrough
CT: control target
= control target key end

     0   :  { %12 = vsyncpa [#allocation3], 0  ;;  %s975_s0 = inlined_call_operand.hbm [shape: bf16[16,64], index: 0, kind: input, shape index: {}]   ;;  %s976_s1 = inlined_call_operand.hbm [shape: bf16[64,256], index: 1, kind: input, shape index: {}]   ;;  %s977_s2 = inlined_call_operand.vmem [shape: f32[1,256], index: 2, kind: input, shape index: {}]   ;;  %s978_s3 = inlined_call_operand.hbm [shape: bf16[64,128], index: 3, kind: input, shape index: {}]   ;;  %s979_s4 = inlined_call_operand.hbm [shape: bf16[128,128], index: 4, kind: input, shape index: {}]   ;;  %s980_s5 = inlined_call_operand.hbm [shape: f32[16,128], index: 5, kind: output, shape index: {0}]   ;;  %s981_s6 = inlined_call_operand.hbm [shape: f32[16,128], index: 6, kind: output, shape index: {1}]  }
   0x1   :  { %13 = vsyncpa [#allocation6], 0 }
   0x2   :  { %14 = vsyncpa [#allocation9], 0 }
   0x3   :  { %15 = vsyncpa [#allocation4], 0 }
   0x4   :  { %16 = vsyncpa [#allocation12], 0  ;;  %s779_s21 = smov [#allocation5]   ;;  %s637_s25 = scalar_lea.hbm %s976_s1, 1024 }
   0x5   :  { %s34_s22 = sshll.u32 %s779_s21, 4  ;;  %p638_p0 = scmp.ne.s32.totalorder %s976_s1, %s637_s25  ;;  %s35_s22 = int_to_ptr.vmem [resolvable:$true] %s34_s22 }
   0x6   :  { %p641_p1 = scmp.lt.u32.totalorder %s637_s25, %s976_s1 }
   0x8   :  { %p643_p2 = pnand %p641_p1, %p638_p0 }
   0xa   :  { %646 = shalt.err (!%p643_p2)
}
   0xb   :  { %s647_s30 = scalar_lea.vmem %s35_s22, 1024  ;;  %p652_p4 = scmp.lt.s32.totalorder %s35_s22, %s35_s22 }
   0xc   :  { %p648_p3 = scmp.ne.s32.totalorder %s35_s22, %s647_s30  ;;  %p653_p5 = scmp.lt.s32.totalorder %s647_s30, %s647_s30 }
   0xe   :  { %p654_p6 = por %p653_p5, %p652_p4 }
  0x10   :  { %p655_p7 = pnand %p654_p6, %p648_p3 }
  0x12   :  { %658 = shalt.err (!%p655_p7)
}
  0x13   :  { %s780_s7 = smov 128   ;;  %s781_s8 = smov 8  }
  0x14   :  { %40 = dma.hbm_to_vmem [thread:$0]  %s976_s1, 1024, %s35_s22, [#allocation6], %s780_s7, %s780_s7, %s781_s8  }
  0x15   :  { %s782_s11 = smov [#allocation2]   ;;  %s659_s15 = scalar_lea.hbm %s975_s0, 128 }
  0x16   :  { %s22_s12 = sshll.u32 %s782_s11, 4  ;;  %p660_p8 = scmp.ne.s32.totalorder %s975_s0, %s659_s15  ;;  %s23_s12 = int_to_ptr.vmem [resolvable:$true] %s22_s12 }
  0x17   :  { %p663_p9 = scmp.lt.u32.totalorder %s659_s15, %s975_s0 }
  0x19   :  { %p665_p10 = pnand %p663_p9, %p660_p8 }
  0x1b   :  { %668 = shalt.err (!%p665_p10)
}
  0x1c   :  { %s669_s20 = scalar_lea.vmem %s23_s12, 128  ;;  %p674_p12 = scmp.lt.s32.totalorder %s23_s12, %s23_s12 }
  0x1d   :  { %p670_p11 = scmp.ne.s32.totalorder %s23_s12, %s669_s20  ;;  %p675_p13 = scmp.lt.s32.totalorder %s669_s20, %s669_s20 }
  0x1f   :  { %p676_p0 = por %p675_p13, %p674_p12 }
  0x21   :  { %p677_p1 = pnand %p676_p0, %p670_p11 }
  0x23   :  { %680 = shalt.err (!%p677_p1)
}
  0x24   :  { %s783_s1 = smov 64   ;;  %s784_s21 = smov 4  }
  0x25   :  { %28 = dma.hbm_to_vmem [thread:$0]  %s975_s0, 128, %s23_s12, [#allocation3], %s783_s1, %s783_s1, %s784_s21  }
  0x26   :  { %s785_s24 = smov [#allocation7]   ;;  %s786_s26 = smov [#allocation8]  }
  0x27   :  { %s48_s25 = sshll.u32 %s785_s24, 4  ;;  %s60_s27 = sshll.u32 %s786_s26, 4  ;;  %s49_s25 = int_to_ptr.vmem [resolvable:$true] %s48_s25  ;;  %s859_s27 = int_to_ptr.vmem [resolvable:$true] %s60_s27 }
  0x28   :  { %s681_s30 = scalar_lea.hbm %s978_s3, 512 }
  0x29   :  { %p682_p2 = scmp.ne.s32.totalorder %s978_s3, %s681_s30  ;;  %p685_p3 = scmp.lt.u32.totalorder %s681_s30, %s978_s3 }
  0x2b   :  { %p687_p4 = pnand %p685_p3, %p682_p2 }
  0x2d   :  { %690 = shalt.err (!%p687_p4)
}
  0x2e   :  { %s691_s0 = scalar_lea.vmem %s49_s25, 512  ;;  %p696_p6 = scmp.lt.s32.totalorder %s49_s25, %s49_s25 }
  0x2f   :  { %p692_p5 = scmp.ne.s32.totalorder %s49_s25, %s691_s0  ;;  %p697_p7 = scmp.lt.s32.totalorder %s691_s0, %s691_s0 }
  0x31   :  { %p698_p8 = por %p697_p7, %p696_p6 }
  0x33   :  { %p699_p9 = pnand %p698_p8, %p692_p5 }
  0x35   :  { %702 = shalt.err (!%p699_p9)
}
  0x36   :  { %54 = dma.hbm_to_vmem [thread:$0]  %s978_s3, 512, %s49_s25, [#allocation6], %s783_s1, %s783_s1, %s784_s21  }
  0x37   :  { %s703_s17 = scalar_lea.hbm %s979_s4, 1024 }
  0x38   :  { %p704_p10 = scmp.ne.s32.totalorder %s979_s4, %s703_s17  ;;  %p707_p11 = scmp.lt.u32.totalorder %s703_s17, %s979_s4 }
  0x3a   :  { %p709_p12 = pnand %p707_p11, %p704_p10 }
  0x3c   :  { %712 = shalt.err (!%p709_p12)
}
  0x3d   :  { %s713_s23 = scalar_lea.vmem %s859_s27, 1024  ;;  %p718_p0 = scmp.lt.s32.totalorder %s859_s27, %s859_s27 }
  0x3e   :  { %p714_p13 = scmp.ne.s32.totalorder %s859_s27, %s713_s23  ;;  %p719_p1 = scmp.lt.s32.totalorder %s713_s23, %s713_s23 }
  0x40   :  { %p720_p2 = por %p719_p1, %p718_p0 }
  0x42   :  { %p721_p3 = pnand %p720_p2, %p714_p13 }
  0x44   :  { %724 = shalt.err (!%p721_p3)
}
  0x45   :  { %66 = dma.hbm_to_vmem [thread:$0]  %s979_s4, 1024, %s859_s27, [#allocation9], %s783_s1, %s783_s1, %s784_s21  }
  0x46   :  { %769 = dma.done.wait [#allocation3], 128  }
  0x47   :  { %770 = vsyncadd [#allocation3], 4294967168 }
  0x48   :  { %771 = dma.done.wait [#allocation6], 1536  }
  0x49   :  { %772 = vsyncadd [#allocation6], 4294965760 }
  0x4a   :  { %773 = dma.done.wait [#allocation9], 1024  }
  0x4b   :  { %774 = vsyncadd [#allocation9], 4294966272  ;;  %v787_v0 = vmov 0   ;;  %v788_v1 = vmov 0.0   ;;  %v604_v2 = vld [vmem:[#allocation5 + $0x4] ss:$8 sps:$4 sm:$0xff]   ;;  %v92_v19 = vlaneseq }
  0x4c   :  { %183 = vmatprep.mubr.bf16.mxu0 %v787_v0  ;;  %551 = vmatprep.subr.bf16.mxu1 %v788_v1  ;;  %v606_v3 = vld [vmem:[#allocation5] ss:$8 sps:$4 sm:$0xff]   ;;  %v607_v4 = vld [vmem:[#allocation5 + $0x14] ss:$8 sps:$4 sm:$0xff]   ;;  %v609_v5 = vld [vmem:[#allocation5 + $0x10] ss:$8 sps:$4 sm:$0xff]  }
  0x4d   :  { %601 = vset.pattern.permute.xlu1 %v787_v0  ;;  %600 = vset.pattern.permute.xlu0 %v787_v0  ;;  %v610_v6 = vld [vmem:[#allocation5 + $0x24] ss:$8 sps:$4 sm:$0xff]   ;;  %v612_v7 = vld [vmem:[#allocation5 + $0x20] ss:$8 sps:$4 sm:$0xff]   ;;  %v613_v9 = vld [vmem:[#allocation5 + $0x34] ss:$8 sps:$4 sm:$0xff]  }
  0x4e   :  { %151 = vmatprep.subr.bf16.mxu0 %v604_v2  ;;  %v617_v8 = vld [vmem:[#allocation8] sm:$0xff]   ;;  %v618_v10 = vld [vmem:[#allocation8 + $0x8] sm:$0xff]   ;;  %v615_v11 = vld [vmem:[#allocation5 + $0x30] ss:$8 sps:$4 sm:$0xff]   ;;  %vm147_vm0 = vcmask 523264   ;;  %vm789_vm1 = vmmov 0  }
  0x4f   :  { %152 = vmatpush1.bf16.msra.mxu0 %v606_v3  ;;  %552 = vmatpush3.bf16.msra.mxu1 %v617_v8  ;;  %v616_v12 = vld [vmem:[#allocation2] sm:$0xff]   ;;  %v619_v13 = vld [vmem:[#allocation8 + $0x10] sm:$0xff]   ;;  %v621_v15 = vld [vmem:[#allocation8 + $0x20] sm:$0xff]   ;;  %v93_v20 = vshrl.u32 %v92_v19, 7  ;;  %s790_s21 = smov 96   ;;  %vm196_vm2 = vcmask 261120  }
  0x50   :  { %153 = vmatprep.subr.bf16.mxu0 %v607_v4  ;;  %553 = vmatprep.subr.bf16.mxu1 %v788_v1  ;;  %v620_v14 = vld [vmem:[#allocation8 + $0x18] sm:$0xff]   ;;  %v622_v16 = vld [vmem:[#allocation8 + $0x28] sm:$0xff]   ;;  %v623_v17 = vld [vmem:[#allocation8 + $0x30] sm:$0xff]   ;;  %v791_v63 = vmov 1  }
  0x51   :  { %v624_v18 = vld [vmem:[#allocation8 + $0x38] sm:$0xff]   ;;  %567 = vmatprep.mubr.msk.bf16.mxu1 %vm789_vm1, %v788_v1  ;;  %v94_v21 = vsub.s32 0, %v93_v20  ;;  %v98_v23 = vsub.s32 1, %v93_v20 }
  0x52   :  { %v90_v22 = vld [vmem:[%s977_s2] sm:$0x3]  ;;  %s792_s2 = smov [#allocation11]  }
  0x53   :  { %154 = vmatpush1.bf16.msra.mxu0 %v609_v5  ;;  %554 = vmatpush3.bf16.msra.mxu1 %v618_v10  ;;  %v95_v24 = vrot.slane %v90_v22, %v94_v21  ;;  %v99_v25 = vrot.slane %v90_v22, %v98_v23  ;;  %v625_v5 = vld [vmem:[#allocation7] sm:$0xff]   ;;  %v628_v8 = vld [vmem:[#allocation7 + $0x18] sm:$0xff]   ;;  %s496_s25 = sshll.u32 %s792_s2, 4  ;;  %s497_s25 = int_to_ptr.vmem [resolvable:$true] %s496_s25 }
  0x54   :  { %155 = vmatprep.subr.bf16.mxu0 %v610_v6  ;;  %555 = vmatprep.subr.bf16.mxu1 %v788_v1  ;;  %v626_v6 = vld [vmem:[#allocation7 + $0x8] sm:$0xff]   ;;  %s725_s26 = scalar_lea.vmem %s497_s25, 256  ;;  %p730_p5 = scmp.lt.s32.totalorder %s497_s25, %s497_s25 }
  0x55   :  { %p726_p4 = scmp.ne.s32.totalorder %s497_s25, %s725_s26  ;;  %p731_p6 = scmp.lt.s32.totalorder %s725_s26, %s725_s26 }
  0x57   :  { %156 = vmatpush1.bf16.msra.mxu0 %v612_v7  ;;  %556 = vmatpush3.bf16.msra.mxu1 %v619_v13  ;;  %v627_v7 = vld [vmem:[#allocation7 + $0x10] sm:$0xff]   ;;  %p732_p7 = por %p731_p6, %p730_p5 }
  0x58   :  { %157 = vmatprep.subr.bf16.mxu0 %v613_v9  ;;  %557 = vmatprep.subr.bf16.mxu1 %v788_v1 }
  0x59   :  { %p733_p8 = pnand %p732_p7, %p726_p4 }
  0x5b   :  { %158 = vmatpush1.bf16.msra.mxu0 %v615_v11  ;;  %558 = vmatpush3.bf16.msra.mxu1 %v620_v14 }
  0x5c   :  { %571 = vmatprep.subr.bf16.mxu0 %v788_v1  ;;  %559 = vmatprep.subr.bf16.mxu1 %v788_v1 }
  0x5e   :  { %523 = vmatmul.mubr.msk.bf16.vlgmr.msra.gmra.mrb[0].mxu0 %vm147_vm0, %v616_v12 }
  0x5f   :  { %560 = vmatpush3.bf16.msra.mxu1 %v621_v15  ;;  %579 = vmatprep.mubr.msk.bf16.mxu0 %vm789_vm1, %v788_v1 }
  0x60   :  { %561 = vmatprep.subr.bf16.mxu1 %v788_v1  ;;  %572 = vmatpush3.bf16.msra.mxu0 %v625_v5 }
  0x61   :  { %573 = vmatprep.subr.bf16.mxu0 %v788_v1 }
  0x63   :  { %562 = vmatpush3.bf16.msra.mxu1 %v622_v16 }
  0x64   :  { %563 = vmatprep.subr.bf16.mxu1 %v788_v1  ;;  %574 = vmatpush3.bf16.msra.mxu0 %v626_v6 }
  0x65   :  { %575 = vmatprep.subr.bf16.mxu0 %v788_v1 }
  0x67   :  { %564 = vmatpush3.bf16.msra.mxu1 %v623_v17 }
  0x68   :  { %565 = vmatprep.subr.bf16.mxu1 %v788_v1  ;;  %576 = vmatpush3.bf16.msra.mxu0 %v627_v7 }
  0x69   :  { %577 = vmatprep.subr.bf16.mxu0 %v788_v1 }
  0x6b   :  { %566 = vmatpush3.bf16.msra.mxu1 %v624_v18 }
  0x6c   :  { %578 = vmatpush3.bf16.msra.mxu0 %v628_v8 }
 0x131   :  { %v185_v26 = vpop.f32.mrb[0].mxu0 }
 0x132   :  { %v186_v27 = vadd.f32 %v185_v26, %v95_v24  ;;  %v187_v28 = vpop.f32.mrb[1].mxu0 }
 0x133   :  { %v188_v29 = vadd.f32 %v187_v28, %v99_v25  ;;  %v189_v30 = vpop.f32.mrb[2].mxu0 }
 0x134   :  { %194 = vst [vmem:[#allocation11] sm:$0xff] %v186_v27  ;;  %v190_v31 = vadd.f32 %v189_v30, %v95_v24  ;;  %v191_v32 = vpop.f32.mrb[3].mxu0 }
 0x135   :  { %240 = vrot.lane.b32.xlu0 %v188_v29, %s790_s21  ;;  %v192_v34 = vadd.f32 %v191_v32, %v99_v25  ;;  %v197_v35 = vsel %vm196_vm2, %v188_v29, 0.0 }
 0x136   :  { %195 = vst [vmem:[#allocation11 + $0x8] sm:$0xff] %v190_v31  ;;  %v303_v33 = vpack.c.bf16 %v190_v31, %v186_v27 }
 0x137   :  { %v200_v40 = vsel %vm196_vm2, %v192_v34, 0.0 }
 0x138   :  { %568 = vmatmul.mubr.bf16.vlgmr.msra.gmra.mrb[0].mxu1 %v303_v33 }
 0x139   :  { %242 = vrot.lane.b32.xlu0 %v192_v34, %s790_s21 }
 0x158   :  { %198 = vadd.xlane.f32.xlu0 %v197_v35 }
 0x1a7   :  { %v241_v36 = vpop.permute.xlu0 %240 }
 0x1a8   :  { %v246_v37 = vsel %vm196_vm2, %v241_v36, 0.0 }
 0x1a9   :  { %247 = vadd.xlane.f32.xlu1 %v246_v37 }
 0x1ab   :  { %v243_v38 = vpop.permute.xlu0 %242 }
 0x1ac   :  { %v249_v39 = vsel %vm196_vm2, %v243_v38, 0.0 }
 0x1ad   :  { %250 = vadd.xlane.f32.xlu1 %v249_v39 }
 0x1b1   :  { %201 = vadd.xlane.f32.xlu1 %v200_v40 }
 0x1e5   :  { %v199_v58 = vpop.xlane.xlu0 %198 }
 0x1e6   :  { %v204_v59 = vmul.f32 0.03125, %v199_v58 }
 0x1e8   :  { %v206_v60 = vsub.f32 %v188_v29, %v204_v59 }
 0x1ea   :  { %v208_v61 = vmul.f32 %v206_v60, %v206_v60 }
 0x1ec   :  { %v210_v62 = vsel %vm196_vm2, %v208_v61, 0.0 }
 0x20b   :  { %v917_v41 = vpop.f32.mrb[0].mxu1 }
 0x20c   :  { %v569_v42 = vpop.f32.mrb[1].mxu1 }
 0x20d   :  { %v919_v43 = vpop.f32.mrb[2].mxu1 }
 0x20e   :  { %v570_v44 = vpop.f32.mrb[3].mxu1 }
 0x236   :  { %v248_v45 = vpop.xlane.xlu1 %247 }
 0x237   :  { %v252_v46 = vmul.f32 0.03125, %v248_v45 }
 0x239   :  { %v921_v47 = vsub.f32 %v188_v29, %v252_v46 }
 0x23a   :  { %v251_v48 = vpop.xlane.xlu1 %250 }
 0x23b   :  { %v253_v49 = vmul.f32 0.03125, %v251_v48  ;;  %v256_v50 = vmul.f32 %v921_v47, %v921_v47 }
 0x23d   :  { %v925_v51 = vsub.f32 %v192_v34, %v253_v49  ;;  %260 = vrot.lane.b32.xlu1 %v256_v50, %s790_s21 }
 0x23e   :  { %v202_v52 = vpop.xlane.xlu1 %201 }
 0x23f   :  { %v205_v53 = vmul.f32 0.03125, %v202_v52  ;;  %v257_v54 = vmul.f32 %v925_v51, %v925_v51 }
 0x241   :  { %v207_v55 = vsub.f32 %v192_v34, %v205_v53  ;;  %262 = vrot.lane.b32.xlu1 %v257_v54, %s790_s21 }
 0x243   :  { %v209_v56 = vmul.f32 %v207_v55, %v207_v55 }
 0x245   :  { %v213_v57 = vsel %vm196_vm2, %v209_v56, 0.0 }
 0x246   :  { %214 = vadd.xlane.f32.xlu0 %v213_v57 }
 0x265   :  { %211 = vadd.xlane.f32.xlu1 %v210_v62 }
 0x276   :  { %233 = vperm.xlu1 %601, %v190_v31  }
 0x27a   :  { %602 = vset.pattern.permute.xlu1 %v791_v63 }
 0x27b   :  { %283 = vperm.xlu1 %602, %v186_v27  }
 0x27f   :  { %287 = vperm.xlu1 %602, %v190_v31  }
 0x2af   :  { %v261_v0 = vpop.permute.xlu1 %260 }
 0x2b0   :  { %v266_v2 = vsel %vm196_vm2, %v261_v0, 0.0 }
 0x2b1   :  { %267 = vadd.xlane.f32.xlu0 %v266_v2 }
 0x2b3   :  { %v263_v3 = vpop.permute.xlu1 %262 }
 0x2b4   :  { %v269_v4 = vsel %vm196_vm2, %v263_v3, 0.0 }
 0x2b5   :  { %270 = vadd.xlane.f32.xlu0 %v269_v4 }
 0x2cb   :  { %228 = vperm.xlu0 %600, %v186_v27  }
 0x2cf   :  { %603 = vset.pattern.permute.xlu0 %v791_v63 }
 0x2d3   :  { %v215_v9 = vpop.xlane.xlu0 %214 }
 0x2d4   :  { %v217_v11 = vmul.f32 0.03125, %v215_v9 }
 0x2d6   :  { %v219_v13 = vadd.f32 1e-05, %v217_v11 }
 0x2d8   :  { %629 = vrsqrt.f32 %v219_v13 }
 0x2e2   :  { %v630_v1 = vpop.eup %629 }
 0x2e3   :  { %v223_v26 = vmul.f32 %v630_v1, %v207_v55 }
 0x2e5   :  { %v225_v32 = vmax.f32 %v223_v26, 0.0 }
 0x2f2   :  { %v212_v10 = vpop.xlane.xlu1 %211 }
 0x2f3   :  { %v216_v12 = vmul.f32 0.03125, %v212_v10 }
 0x2f5   :  { %v218_v14 = vadd.f32 1e-05, %v216_v12 }
 0x2f6   :  { %v234_v21 = vpop.permute.xlu1 %233 }
 0x2f7   :  { %631 = vrsqrt.f32 %v218_v14  ;;  %v237_v37 = vmul.f32 %v234_v21, %v225_v32 }
 0x2fa   :  { %v284_v25 = vpop.permute.xlu1 %283 }
 0x2fe   :  { %v288_v36 = vpop.permute.xlu1 %287 }
 0x301   :  { %v632_v22 = vpop.eup %631 }
 0x302   :  { %v222_v27 = vmul.f32 %v632_v22, %v206_v60 }
 0x304   :  { %v224_v34 = vmax.f32 %v222_v27, 0.0 }
 0x33e   :  { %v268_v15 = vpop.xlane.xlu0 %267 }
 0x33f   :  { %v272_v16 = vmul.f32 0.03125, %v268_v15 }
 0x341   :  { %v274_v17 = vadd.f32 1e-05, %v272_v16 }
 0x342   :  { %v271_v18 = vpop.xlane.xlu0 %270 }
 0x343   :  { %633 = vrsqrt.f32 %v274_v17  ;;  %v273_v19 = vmul.f32 0.03125, %v271_v18 }
 0x345   :  { %v275_v20 = vadd.f32 1e-05, %v273_v19 }
 0x347   :  { %635 = vrsqrt.f32 %v275_v20 }
 0x34a   :  { %v229_v31 = vpop.permute.xlu0 %228 }
 0x34b   :  { %v236_v39 = vmul.f32 %v229_v31, %v224_v34 }
 0x34d   :  { %v634_v23 = vpop.eup %633 }
 0x34e   :  { %v278_v24 = vmul.f32 %v634_v23, %v921_v47 }
 0x350   :  { %v280_v28 = vmax.f32 %v278_v24, 0.0 }
 0x351   :  { %v636_v29 = vpop.eup %635 }
 0x352   :  { %v279_v30 = vmul.f32 %v636_v29, %v925_v51  ;;  %v290_v35 = vmul.f32 %v284_v25, %v280_v28 }
 0x354   :  { %v281_v33 = vmax.f32 %v279_v30, 0.0  ;;  %v292_v42 = vsel %vm196_vm2, %v236_v39, %v290_v35 }
 0x356   :  { %v291_v38 = vmul.f32 %v288_v36, %v281_v33 }
 0x358   :  { %v293_v40 = vsel %vm196_vm2, %v237_v37, %v291_v38 }
 0x359   :  { %v294_v44 = vpack.c.bf16 %v293_v40, %v292_v42 }
 0x35b   :  { %580 = vmatmul.mubr.msk.bf16.vlgmr.msra.gmra.mrb[4].mxu0 %vm147_vm0, %v294_v44 }
 0x35c   :  { %736 = shalt.err (!%p733_p8)
}
 0x35d   :  { %s737_s29 = scalar_lea.hbm %s981_s6, 256 }
 0x35e   :  { %p738_p9 = scmp.ne.s32.totalorder %s981_s6, %s737_s29  ;;  %p741_p10 = scmp.lt.u32.totalorder %s737_s29, %s981_s6 }
 0x360   :  { %p743_p11 = pnand %p741_p10, %p738_p9 }
 0x362   :  { %746 = shalt.err (!%p743_p11)
}
 0x363   :  { %502 = dma.vmem_to_hbm [thread:$0]  %s497_s25, 256, %s981_s6, [#allocation12], %s780_s7, %s780_s7, %s781_s8  }
 0x364   :  { %s793_s12 = smov [#allocation10]  }
 0x365   :  { %s484_s14 = sshll.u32 %s793_s12, 4  ;;  %s485_s14 = int_to_ptr.vmem [resolvable:$true] %s484_s14 }
 0x366   :  { %s747_s15 = scalar_lea.vmem %s485_s14, 256  ;;  %p752_p13 = scmp.lt.s32.totalorder %s485_s14, %s485_s14 }
 0x367   :  { %p748_p12 = scmp.ne.s32.totalorder %s485_s14, %s747_s15  ;;  %p753_p0 = scmp.lt.s32.totalorder %s747_s15, %s747_s15 }
 0x369   :  { %p754_p1 = por %p753_p0, %p752_p13 }
 0x36b   :  { %p755_p2 = pnand %p754_p1, %p748_p12 }
 0x42e   :  { %v470_v45 = vpop.f32.mrb[4].mxu0 }
 0x42f   :  { %v471_v46 = vadd.f32 %v470_v45, %v917_v41  ;;  %v581_v47 = vpop.f32.mrb[5].mxu0 }
 0x430   :  { %v473_v48 = vpop.f32.mrb[6].mxu0 }
 0x431   :  { %477 = vst [vmem:[#allocation10] sm:$0xff] %v471_v46  ;;  %v474_v49 = vadd.f32 %v473_v48, %v919_v43  ;;  %v582_v50 = vpop.f32.mrb[7].mxu0 }
 0x433   :  { %478 = vst [vmem:[#allocation10 + $0x8] sm:$0xff] %v474_v49 }
 0x434   :  { %758 = shalt.err (!%p755_p2)
}
 0x435   :  { %s759_s17 = scalar_lea.hbm %s980_s5, 256 }
 0x436   :  { %p760_p3 = scmp.ne.s32.totalorder %s980_s5, %s759_s17  ;;  %p763_p4 = scmp.lt.u32.totalorder %s759_s17, %s980_s5 }
 0x438   :  { %p765_p5 = pnand %p763_p4, %p760_p3 }
 0x43a   :  { %768 = shalt.err (!%p765_p5)
}
 0x43b   :  { %490 = dma.vmem_to_hbm [thread:$0]  %s485_s14, 256, %s980_s5, [#allocation4], %s780_s7, %s780_s7, %s781_s8  }
 0x43c   :  { %775 = dma.done.wait [#allocation4], 256  }
 0x43d   :  { %776 = vsyncadd [#allocation4], 4294967040 }
 0x43e   :  { %777 = dma.done.wait [#allocation12], 256  }
 0x43f   :  { %778 = vsyncadd [#allocation12], 4294967040 }
 0x440   :  { %509 = vsyncpa [#allocation3], 1 }
 0x441   :  { %510 = vsyncpa [#allocation6], 1 }
 0x442   :  { %511 = vsyncpa [#allocation9], 1 }
 0x443   :  { %512 = vsyncpa [#allocation4], 1 }
 0x444   :  { %513 = vsyncpa [#allocation12], 1 }

// kernel: tpu_custom_call.1
= control target key start
LH: loop header
LB: loop body
LE: loop exit
PB: predicated region body
PF: predicated region fallthrough
CT: control target
= control target key end

     0   :  { %12 = vsyncpa [#allocation3], 0  ;;  %s975_s0 = inlined_call_operand.hbm [shape: bf16[16,64], index: 0, kind: input, shape index: {}]   ;;  %s976_s1 = inlined_call_operand.hbm [shape: bf16[64,256], index: 1, kind: input, shape index: {}]   ;;  %s977_s2 = inlined_call_operand.vmem [shape: f32[1,256], index: 2, kind: input, shape index: {}]   ;;  %s978_s3 = inlined_call_operand.hbm [shape: bf16[64,128], index: 3, kind: input, shape index: {}]   ;;  %s979_s4 = inlined_call_operand.hbm [shape: bf16[128,128], index: 4, kind: input, shape index: {}]   ;;  %s980_s5 = inlined_call_operand.hbm [shape: f32[16,128], index: 5, kind: output, shape index: {0}]   ;;  %s981_s6 = inlined_call_operand.hbm [shape: f32[16,128], index: 6, kind: output, shape index: {1}]  }
   0x1   :  { %13 = vsyncpa [#allocation6], 0 }
   0x2   :  { %14 = vsyncpa [#allocation9], 0 }
   0x3   :  { %15 = vsyncpa [#allocation4], 0 }
   0x4   :  { %16 = vsyncpa [#allocation12], 0  ;;  %s779_s21 = smov [#allocation5]   ;;  %s637_s25 = scalar_lea.hbm %s976_s1, 1024 }
   0x5   :  { %s34_s22 = sshll.u32 %s779_s21, 4  ;;  %p638_p0 = scmp.ne.s32.totalorder %s976_s1, %s637_s25  ;;  %s35_s22 = int_to_ptr.vmem [resolvable:$true] %s34_s22 }
   0x6   :  { %p641_p1 = scmp.lt.u32.totalorder %s637_s25, %s976_s1 }
   0x8   :  { %p643_p2 = pnand %p641_p1, %p638_p0 }
   0xa   :  { %646 = shalt.err (!%p643_p2)
}
   0xb   :  { %s647_s30 = scalar_lea.vmem %s35_s22, 1024  ;;  %p652_p4 = scmp.lt.s32.totalorder %s35_s22, %s35_s22 }
   0xc   :  { %p648_p3 = scmp.ne.s32.totalorder %s35_s22, %s647_s30  ;;  %p653_p5 = scmp.lt.s32.totalorder %s647_s30, %s647_s30 }
   0xe   :  { %p654_p6 = por %p653_p5, %p652_p4 }
  0x10   :  { %p655_p7 = pnand %p654_p6, %p648_p3 }
  0x12   :  { %658 = shalt.err (!%p655_p7)
}
  0x13   :  { %s780_s7 = smov 128   ;;  %s781_s8 = smov 8  }
  0x14   :  { %40 = dma.hbm_to_vmem [thread:$0]  %s976_s1, 1024, %s35_s22, [#allocation6], %s780_s7, %s780_s7, %s781_s8  }
  0x15   :  { %s782_s11 = smov [#allocation2]   ;;  %s659_s15 = scalar_lea.hbm %s975_s0, 128 }
  0x16   :  { %s22_s12 = sshll.u32 %s782_s11, 4  ;;  %p660_p8 = scmp.ne.s32.totalorder %s975_s0, %s659_s15  ;;  %s23_s12 = int_to_ptr.vmem [resolvable:$true] %s22_s12 }
  0x17   :  { %p663_p9 = scmp.lt.u32.totalorder %s659_s15, %s975_s0 }
  0x19   :  { %p665_p10 = pnand %p663_p9, %p660_p8 }
  0x1b   :  { %668 = shalt.err (!%p665_p10)
}
  0x1c   :  { %s669_s20 = scalar_lea.vmem %s23_s12, 128  ;;  %p674_p12 = scmp.lt.s32.totalorder %s23_s12, %s23_s12 }
  0x1d   :  { %p670_p11 = scmp.ne.s32.totalorder %s23_s12, %s669_s20  ;;  %p675_p13 = scmp.lt.s32.totalorder %s669_s20, %s669_s20 }
  0x1f   :  { %p676_p0 = por %p675_p13, %p674_p12 }
  0x21   :  { %p677_p1 = pnand %p676_p0, %p670_p11 }
  0x23   :  { %680 = shalt.err (!%p677_p1)
}
  0x24   :  { %s783_s1 = smov 64   ;;  %s784_s21 = smov 4  }
  0x25   :  { %28 = dma.hbm_to_vmem [thread:$0]  %s975_s0, 128, %s23_s12, [#allocation3], %s783_s1, %s783_s1, %s784_s21  }
  0x26   :  { %s785_s24 = smov [#allocation7]   ;;  %s786_s26 = smov [#allocation8]  }
  0x27   :  { %s48_s25 = sshll.u32 %s785_s24, 4  ;;  %s60_s27 = sshll.u32 %s786_s26, 4  ;;  %s49_s25 = int_to_ptr.vmem [resolvable:$true] %s48_s25  ;;  %s859_s27 = int_to_ptr.vmem [resolvable:$true] %s60_s27 }
  0x28   :  { %s681_s30 = scalar_lea.hbm %s978_s3, 512 }
  0x29   :  { %p682_p2 = scmp.ne.s32.totalorder %s978_s3, %s681_s30  ;;  %p685_p3 = scmp.lt.u32.totalorder %s681_s30, %s978_s3 }
  0x2b   :  { %p687_p4 = pnand %p685_p3, %p682_p2 }
  0x2d   :  { %690 = shalt.err (!%p687_p4)
}
  0x2e   :  { %s691_s0 = scalar_lea.vmem %s49_s25, 512  ;;  %p696_p6 = scmp.lt.s32.totalorder %s49_s25, %s49_s25 }
  0x2f   :  { %p692_p5 = scmp.ne.s32.totalorder %s49_s25, %s691_s0  ;;  %p697_p7 = scmp.lt.s32.totalorder %s691_s0, %s691_s0 }
  0x31   :  { %p698_p8 = por %p697_p7, %p696_p6 }
  0x33   :  { %p699_p9 = pnand %p698_p8, %p692_p5 }
  0x35   :  { %702 = shalt.err (!%p699_p9)
}
  0x36   :  { %54 = dma.hbm_to_vmem [thread:$0]  %s978_s3, 512, %s49_s25, [#allocation6], %s783_s1, %s783_s1, %s784_s21  }
  0x37   :  { %s703_s17 = scalar_lea.hbm %s979_s4, 1024 }
  0x38   :  { %p704_p10 = scmp.ne.s32.totalorder %s979_s4, %s703_s17  ;;  %p707_p11 = scmp.lt.u32.totalorder %s703_s17, %s979_s4 }
  0x3a   :  { %p709_p12 = pnand %p707_p11, %p704_p10 }
  0x3c   :  { %712 = shalt.err (!%p709_p12)
}
  0x3d   :  { %s713_s23 = scalar_lea.vmem %s859_s27, 1024  ;;  %p718_p0 = scmp.lt.s32.totalorder %s859_s27, %s859_s27 }
  0x3e   :  { %p714_p13 = scmp.ne.s32.totalorder %s859_s27, %s713_s23  ;;  %p719_p1 = scmp.lt.s32.totalorder %s713_s23, %s713_s23 }
  0x40   :  { %p720_p2 = por %p719_p1, %p718_p0 }
  0x42   :  { %p721_p3 = pnand %p720_p2, %p714_p13 }
  0x44   :  { %724 = shalt.err (!%p721_p3)
}
  0x45   :  { %66 = dma.hbm_to_vmem [thread:$0]  %s979_s4, 1024, %s859_s27, [#allocation9], %s783_s1, %s783_s1, %s784_s21  }
  0x46   :  { %769 = dma.done.wait [#allocation3], 128  }
  0x47   :  { %770 = vsyncadd [#allocation3], 4294967168 }
  0x48   :  { %771 = dma.done.wait [#allocation6], 1536  }
  0x49   :  { %772 = vsyncadd [#allocation6], 4294965760 }
  0x4a   :  { %773 = dma.done.wait [#allocation9], 1024  }
  0x4b   :  { %774 = vsyncadd [#allocation9], 4294966272  ;;  %v787_v0 = vmov 0   ;;  %v788_v1 = vmov 0.0   ;;  %v604_v2 = vld [vmem:[#allocation5 + $0x4] ss:$8 sps:$4 sm:$0xff]   ;;  %v92_v19 = vlaneseq }
  0x4c   :  { %183 = vmatprep.mubr.bf16.mxu0 %v787_v0  ;;  %551 = vmatprep.subr.bf16.mxu1 %v788_v1  ;;  %v606_v3 = vld [vmem:[#allocation5] ss:$8 sps:$4 sm:$0xff]   ;;  %v607_v4 = vld [vmem:[#allocation5 + $0x14] ss:$8 sps:$4 sm:$0xff]   ;;  %v609_v5 = vld [vmem:[#allocation5 + $0x10] ss:$8 sps:$4 sm:$0xff]  }
  0x4d   :  { %601 = vset.pattern.permute.xlu1 %v787_v0  ;;  %600 = vset.pattern.permute.xlu0 %v787_v0  ;;  %v610_v6 = vld [vmem:[#allocation5 + $0x24] ss:$8 sps:$4 sm:$0xff]   ;;  %v612_v7 = vld [vmem:[#allocation5 + $0x20] ss:$8 sps:$4 sm:$0xff]   ;;  %v613_v9 = vld [vmem:[#allocation5 + $0x34] ss:$8 sps:$4 sm:$0xff]  }
  0x4e   :  { %151 = vmatprep.subr.bf16.mxu0 %v604_v2  ;;  %v617_v8 = vld [vmem:[#allocation8] sm:$0xff]   ;;  %v618_v10 = vld [vmem:[#allocation8 + $0x8] sm:$0xff]   ;;  %v615_v11 = vld [vmem:[#allocation5 + $0x30] ss:$8 sps:$4 sm:$0xff]   ;;  %vm147_vm0 = vcmask 523264   ;;  %vm789_vm1 = vmmov 0  }
  0x4f   :  { %152 = vmatpush1.bf16.msra.mxu0 %v606_v3  ;;  %552 = vmatpush3.bf16.msra.mxu1 %v617_v8  ;;  %v616_v12 = vld [vmem:[#allocation2] sm:$0xff]   ;;  %v619_v13 = vld [vmem:[#allocation8 + $0x10] sm:$0xff]   ;;  %v621_v15 = vld [vmem:[#allocation8 + $0x20] sm:$0xff]   ;;  %v93_v20 = vshrl.u32 %v92_v19, 7  ;;  %s790_s21 = smov 96   ;;  %vm196_vm2 = vcmask 261120  }
  0x50   :  { %153 = vmatprep.subr.bf16.mxu0 %v607_v4  ;;  %553 = vmatprep.subr.bf16.mxu1 %v788_v1  ;;  %v620_v14 = vld [vmem:[#allocation8 + $0x18] sm:$0xff]   ;;  %v622_v16 = vld [vmem:[#allocation8 + $0x28] sm:$0xff]   ;;  %v623_v17 = vld [vmem:[#allocation8 + $0x30] sm:$0xff]   ;;  %v791_v63 = vmov 1  }
  0x51   :  { %v624_v18 = vld [vmem:[#allocation8 + $0x38] sm:$0xff]   ;;  %567 = vmatprep.mubr.msk.bf16.mxu1 %vm789_vm1, %v788_v1  ;;  %v94_v21 = vsub.s32 0, %v93_v20  ;;  %v98_v23 = vsub.s32 1, %v93_v20 }
  0x52   :  { %v90_v22 = vld [vmem:[%s977_s2] sm:$0x3]  ;;  %s792_s2 = smov [#allocation11]  }
  0x53   :  { %154 = vmatpush1.bf16.msra.mxu0 %v609_v5  ;;  %554 = vmatpush3.bf16.msra.mxu1 %v618_v10  ;;  %v95_v24 = vrot.slane %v90_v22, %v94_v21  ;;  %v99_v25 = vrot.slane %v90_v22, %v98_v23  ;;  %v625_v5 = vld [vmem:[#allocation7] sm:$0xff]   ;;  %v628_v8 = vld [vmem:[#allocation7 + $0x18] sm:$0xff]   ;;  %s496_s25 = sshll.u32 %s792_s2, 4  ;;  %s497_s25 = int_to_ptr.vmem [resolvable:$true] %s496_s25 }
  0x54   :  { %155 = vmatprep.subr.bf16.mxu0 %v610_v6  ;;  %555 = vmatprep.subr.bf16.mxu1 %v788_v1  ;;  %v626_v6 = vld [vmem:[#allocation7 + $0x8] sm:$0xff]   ;;  %s725_s26 = scalar_lea.vmem %s497_s25, 256  ;;  %p730_p5 = scmp.lt.s32.totalorder %s497_s25, %s497_s25 }
  0x55   :  { %p726_p4 = scmp.ne.s32.totalorder %s497_s25, %s725_s26  ;;  %p731_p6 = scmp.lt.s32.totalorder %s725_s26, %s725_s26 }
  0x57   :  { %156 = vmatpush1.bf16.msra.mxu0 %v612_v7  ;;  %556 = vmatpush3.bf16.msra.mxu1 %v619_v13  ;;  %v627_v7 = vld [vmem:[#allocation7 + $0x10] sm:$0xff]   ;;  %p732_p7 = por %p731_p6, %p730_p5 }
  0x58   :  { %157 = vmatprep.subr.bf16.mxu0 %v613_v9  ;;  %557 = vmatprep.subr.bf16.mxu1 %v788_v1 }
  0x59   :  { %p733_p8 = pnand %p732_p7, %p726_p4 }
  0x5b   :  { %158 = vmatpush1.bf16.msra.mxu0 %v615_v11  ;;  %558 = vmatpush3.bf16.msra.mxu1 %v620_v14 }
  0x5c   :  { %571 = vmatprep.subr.bf16.mxu0 %v788_v1  ;;  %559 = vmatprep.subr.bf16.mxu1 %v788_v1 }
  0x5e   :  { %523 = vmatmul.mubr.msk.bf16.vlgmr.msra.gmra.mrb[0].mxu0 %vm147_vm0, %v616_v12 }
  0x5f   :  { %560 = vmatpush3.bf16.msra.mxu1 %v621_v15  ;;  %579 = vmatprep.mubr.msk.bf16.mxu0 %vm789_vm1, %v788_v1 }
  0x60   :  { %561 = vmatprep.subr.bf16.mxu1 %v788_v1  ;;  %572 = vmatpush3.bf16.msra.mxu0 %v625_v5 }
  0x61   :  { %573 = vmatprep.subr.bf16.mxu0 %v788_v1 }
  0x63   :  { %562 = vmatpush3.bf16.msra.mxu1 %v622_v16 }
  0x64   :  { %563 = vmatprep.subr.bf16.mxu1 %v788_v1  ;;  %574 = vmatpush3.bf16.msra.mxu0 %v626_v6 }
  0x65   :  { %575 = vmatprep.subr.bf16.mxu0 %v788_v1 }
  0x67   :  { %564 = vmatpush3.bf16.msra.mxu1 %v623_v17 }
  0x68   :  { %565 = vmatprep.subr.bf16.mxu1 %v788_v1  ;;  %576 = vmatpush3.bf16.msra.mxu0 %v627_v7 }
  0x69   :  { %577 = vmatprep.subr.bf16.mxu0 %v788_v1 }
  0x6b   :  { %566 = vmatpush3.bf16.msra.mxu1 %v624_v18 }
  0x6c   :  { %578 = vmatpush3.bf16.msra.mxu0 %v628_v8 }
 0x131   :  { %v185_v26 = vpop.f32.mrb[0].mxu0 }
 0x132   :  { %v186_v27 = vadd.f32 %v185_v26, %v95_v24  ;;  %v187_v28 = vpop.f32.mrb[1].mxu0 }
 0x133   :  { %v188_v29 = vadd.f32 %v187_v28, %v99_v25  ;;  %v189_v30 = vpop.f32.mrb[2].mxu0 }
 0x134   :  { %194 = vst [vmem:[#allocation11] sm:$0xff] %v186_v27  ;;  %v190_v31 = vadd.f32 %v189_v30, %v95_v24  ;;  %v191_v32 = vpop.f32.mrb[3].mxu0 }
 0x135   :  { %240 = vrot.lane.b32.xlu0 %v188_v29, %s790_s21  ;;  %v192_v34 = vadd.f32 %v191_v32, %v99_v25  ;;  %v197_v35 = vsel %vm196_vm2, %v188_v29, 0.0 }
 0x136   :  { %195 = vst [vmem:[#allocation11 + $0x8] sm:$0xff] %v190_v31  ;;  %v303_v33 = vpack.c.bf16 %v190_v31, %v186_v27 }
 0x137   :  { %v200_v40 = vsel %vm196_vm2, %v192_v34, 0.0 }
 0x138   :  { %568 = vmatmul.mubr.bf16.vlgmr.msra.gmra.mrb[0].mxu1 %v303_v33 }
 0x139   :  { %242 = vrot.lane.b32.xlu0 %v192_v34, %s790_s21 }
 0x158   :  { %198 = vadd.xlane.f32.xlu0 %v197_v35 }
 0x1a7   :  { %v241_v36 = vpop.permute.xlu0 %240 }
 0x1a8   :  { %v246_v37 = vsel %vm196_vm2, %v241_v36, 0.0 }
 0x1a9   :  { %247 = vadd.xlane.f32.xlu1 %v246_v37 }
 0x1ab   :  { %v243_v38 = vpop.permute.xlu0 %242 }
 0x1ac   :  { %v249_v39 = vsel %vm196_vm2, %v243_v38, 0.0 }
 0x1ad   :  { %250 = vadd.xlane.f32.xlu1 %v249_v39 }
 0x1b1   :  { %201 = vadd.xlane.f32.xlu1 %v200_v40 }
 0x1e5   :  { %v199_v58 = vpop.xlane.xlu0 %198 }
 0x1e6   :  { %v204_v59 = vmul.f32 0.03125, %v199_v58 }
 0x1e8   :  { %v206_v60 = vsub.f32 %v188_v29, %v204_v59 }
 0x1ea   :  { %v208_v61 = vmul.f32 %v206_v60, %v206_v60 }
 0x1ec   :  { %v210_v62 = vsel %vm196_vm2, %v208_v61, 0.0 }
 0x20b   :  { %v917_v41 = vpop.f32.mrb[0].mxu1 }
 0x20c   :  { %v569_v42 = vpop.f32.mrb[1].mxu1 }
 0x20d   :  { %v919_v43 = vpop.f32.mrb[2].mxu1 }
 0x20e   :  { %v570_v44 = vpop.f32.mrb[3].mxu1 }
 0x236   :  { %v248_v45 = vpop.xlane.xlu1 %247 }
 0x237   :  { %v252_v46 = vmul.f32 0.03125, %v248_v45 }
 0x239   :  { %v921_v47 = vsub.f32 %v188_v29, %v252_v46 }
 0x23a   :  { %v251_v48 = vpop.xlane.xlu1 %250 }
 0x23b   :  { %v253_v49 = vmul.f32 0.03125, %v251_v48  ;;  %v256_v50 = vmul.f32 %v921_v47, %v921_v47 }
 0x23d   :  { %v925_v51 = vsub.f32 %v192_v34, %v253_v49  ;;  %260 = vrot.lane.b32.xlu1 %v256_v50, %s790_s21 }
 0x23e   :  { %v202_v52 = vpop.xlane.xlu1 %201 }
 0x23f   :  { %v205_v53 = vmul.f32 0.03125, %v202_v52  ;;  %v257_v54 = vmul.f32 %v925_v51, %v925_v51 }
 0x241   :  { %v207_v55 = vsub.f32 %v192_v34, %v205_v53  ;;  %262 = vrot.lane.b32.xlu1 %v257_v54, %s790_s21 }
 0x243   :  { %v209_v56 = vmul.f32 %v207_v55, %v207_v55 }
 0x245   :  { %v213_v57 = vsel %vm196_vm2, %v209_v56, 0.0 }
 0x246   :  { %214 = vadd.xlane.f32.xlu0 %v213_v57 }
 0x265   :  { %211 = vadd.xlane.f32.xlu1 %v210_v62 }
 0x276   :  { %233 = vperm.xlu1 %601, %v190_v31  }
 0x27a   :  { %602 = vset.pattern.permute.xlu1 %v791_v63 }
 0x27b   :  { %283 = vperm.xlu1 %602, %v186_v27  }
 0x27f   :  { %287 = vperm.xlu1 %602, %v190_v31  }
 0x2af   :  { %v261_v0 = vpop.permute.xlu1 %260 }
 0x2b0   :  { %v266_v2 = vsel %vm196_vm2, %v261_v0, 0.0 }
 0x2b1   :  { %267 = vadd.xlane.f32.xlu0 %v266_v2 }
 0x2b3   :  { %v263_v3 = vpop.permute.xlu1 %262 }
 0x2b4   :  { %v269_v4 = vsel %vm196_vm2, %v263_v3, 0.0 }
 0x2b5   :  { %270 = vadd.xlane.f32.xlu0 %v269_v4 }
 0x2cb   :  { %228 = vperm.xlu0 %600, %v186_v27  }
 0x2cf   :  { %603 = vset.pattern.permute.xlu0 %v791_v63 }
 0x2d3   :  { %v215_v9 = vpop.xlane.xlu0 %214 }
 0x2d4   :  { %v217_v11 = vmul.f32 0.03125, %v215_v9 }
 0x2d6   :  { %v219_v13 = vadd.f32 1e-05, %v217_v11 }
 0x2d8   :  { %629 = vrsqrt.f32 %v219_v13 }
 0x2e2   :  { %v630_v1 = vpop.eup %629 }
 0x2e3   :  { %v223_v26 = vmul.f32 %v630_v1, %v207_v55 }
 0x2e5   :  { %v225_v32 = vmax.f32 %v223_v26, 0.0 }
 0x2f2   :  { %v212_v10 = vpop.xlane.xlu1 %211 }
 0x2f3   :  { %v216_v12 = vmul.f32 0.03125, %v212_v10 }
 0x2f5   :  { %v218_v14 = vadd.f32 1e-05, %v216_v12 }
 0x2f6   :  { %v234_v21 = vpop.permute.xlu1 %233 }
 0x2f7   :  { %631 = vrsqrt.f32 %v218_v14  ;;  %v237_v37 = vmul.f32 %v234_v21, %v225_v32 }
 0x2fa   :  { %v284_v25 = vpop.permute.xlu1 %283 }
 0x2fe   :  { %v288_v36 = vpop.permute.xlu1 %287 }
 0x301   :  { %v632_v22 = vpop.eup %631 }
 0x302   :  { %v222_v27 = vmul.f32 %v632_v22, %v206_v60 }
 0x304   :  { %v224_v34 = vmax.f32 %v222_v27, 0.0 }
 0x33e   :  { %v268_v15 = vpop.xlane.xlu0 %267 }
 0x33f   :  { %v272_v16 = vmul.f32 0.03125, %v268_v15 }
 0x341   :  { %v274_v17 = vadd.f32 1e-05, %v272_v16 }
 0x342   :  { %v271_v18 = vpop.xlane.xlu0 %270 }
 0x343   :  { %633 = vrsqrt.f32 %v274_v17  ;;  %v273_v19 = vmul.f32 0.03125, %v271_v18 }
 0x345   :  { %v275_v20 = vadd.f32 1e-05, %v273_v19 }
 0x347   :  { %635 = vrsqrt.f32 %v275_v20 }
 0x34a   :  { %v229_v31 = vpop.permute.xlu0 %228 }
 0x34b   :  { %v236_v39 = vmul.f32 %v229_v31, %v224_v34 }
 0x34d   :  { %v634_v23 = vpop.eup %633 }
 0x34e   :  { %v278_v24 = vmul.f32 %v634_v23, %v921_v47 }
 0x350   :  { %v280_v28 = vmax.f32 %v278_v24, 0.0 }
 0x351   :  { %v636_v29 = vpop.eup %635 }
 0x352   :  { %v279_v30 = vmul.f32 %v636_v29, %v925_v51  ;;  %v290_v35 = vmul.f32 %v284_v25, %v280_v28 }
 0x354   :  { %v281_v33 = vmax.f32 %v279_v30, 0.0  ;;  %v292_v42 = vsel %vm196_vm2, %v236_v39, %v290_v35 }
 0x356   :  { %v291_v38 = vmul.f32 %v288_v36, %v281_v33 }
 0x358   :  { %v293_v40 = vsel %vm196_vm2, %v237_v37, %v291_v38 }
 0x359   :  { %v294_v44 = vpack.c.bf16 %v293_v40, %v292_v42 }
 0x35b   :  { %580 = vmatmul.mubr.msk.bf16.vlgmr.msra.gmra.mrb[4].mxu0 %vm147_vm0, %v294_v44 }
 0x35c   :  { %736 = shalt.err (!%p733_p8)
}
 0x35d   :  { %s737_s29 = scalar_lea.hbm %s981_s6, 256 }
 0x35e   :  { %p738_p9 = scmp.ne.s32.totalorder %s981_s6, %s737_s29  ;;  %p741_p10 = scmp.lt.u32.totalorder %s737_s29, %s981_s6 }
 0x360   :  { %p743_p11 = pnand %p741_p10, %p738_p9 }
 0x362   :  { %746 = shalt.err (!%p743_p11)
}
 0x363   :  { %502 = dma.vmem_to_hbm [thread:$0]  %s497_s25, 256, %s981_s6, [#allocation12], %s780_s7, %s780_s7, %s781_s8  }
 0x364   :  { %s793_s12 = smov [#allocation10]  }
 0x365   :  { %s484_s14 = sshll.u32 %s793_s12, 4  ;;  %s485_s14 = int_to_ptr.vmem [resolvable:$true] %s484_s14 }
 0x366   :  { %s747_s15 = scalar_lea.vmem %s485_s14, 256  ;;  %p752_p13 = scmp.lt.s32.totalorder %s485_s14, %s485_s14 }
 0x367   :  { %p748_p12 = scmp.ne.s32.totalorder %s485_s14, %s747_s15  ;;  %p753_p0 = scmp.lt.s32.totalorder %s747_s15, %s747_s15 }
 0x369   :  { %p754_p1 = por %p753_p0, %p752_p13 }
 0x36b   :  { %p755_p2 = pnand %p754_p1, %p748_p12 }
 0x42e   :  { %v470_v45 = vpop.f32.mrb[4].mxu0 }
 0x42f   :  { %v471_v46 = vadd.f32 %v470_v45, %v917_v41  ;;  %v581_v47 = vpop.f32.mrb[5].mxu0 }
 0x430   :  { %v473_v48 = vpop.f32.mrb[6].mxu0 }
 0x431   :  { %477 = vst [vmem:[#allocation10] sm:$0xff] %v471_v46  ;;  %v474_v49 = vadd.f32 %v473_v48, %v919_v43  ;;  %v582_v50 = vpop.f32.mrb[7].mxu0 }
 0x433   :  { %478 = vst [vmem:[#allocation10 + $0x8] sm:$0xff] %v474_v49 }
 0x434   :  { %758 = shalt.err (!%p755_p2)
}
 0x435   :  { %s759_s17 = scalar_lea.hbm %s980_s5, 256 }
 0x436   :  { %p760_p3 = scmp.ne.s32.totalorder %s980_s5, %s759_s17  ;;  %p763_p4 = scmp.lt.u32.totalorder %s759_s17, %s980_s5 }
 0x438   :  { %p765_p5 = pnand %p763_p4, %p760_p3 }
 0x43a   :  { %768 = shalt.err (!%p765_p5)
}
 0x43b   :  { %490 = dma.vmem_to_hbm [thread:$0]  %s485_s14, 256, %s980_s5, [#allocation4], %s780_s7, %s780_s7, %s781_s8  }
 0x43c   :  { %775 = dma.done.wait [#allocation4], 256  }
 0x43d   :  { %776 = vsyncadd [#allocation4], 4294967040 }
 0x43e   :  { %777 = dma.done.wait [#allocation12], 256  }
 0x43f   :  { %778 = vsyncadd [#allocation12], 4294967040 }
 0x440   :  { %509 = vsyncpa [#allocation3], 1 }
 0x441   :  { %510 = vsyncpa [#allocation6], 1 }
 0x442   :  { %511 = vsyncpa [#allocation9], 1 }
 0x443   :  { %512 = vsyncpa [#allocation4], 1 }
 0x444   :  { %513 = vsyncpa [#allocation12], 1 }

</bundles_post_ra>
